<compile_context>
chip_gen: v7x
topology: tpu7x:2x2x1
jax: 0.10.0
libtpu: 0.0.40
codegen_flags: <defaults>
</compile_context>

<pallas_src>
import math
import functools

import jax
import jax.numpy as jnp
import numpy as np
from jax.experimental import pallas as pl
from jax.experimental.pallas import tpu as pltpu


def _encoder_kernel(num_heads,
                    x_ref,
                    wq_ref, bq_ref, wk_ref, bk_ref, wv_ref, bv_ref,
                    wo_ref, bo_ref,
                    w1_ref, b1_ref, w2_ref, b2_ref,
                    out_ref, attn_ref):
    """One grid step == one batch element."""
    _, S, D = x_ref.shape
    H = num_heads
    Dh = D // H
    cdt = wq_ref.dtype  # MXU operand dtype (f32 or bf16); accumulation is f32.

    x = x_ref[0]                 # (S, D) f32 (kept in f32 for residuals)
    xc = x.astype(cdt)

    # QKV projections; biases added on the packed (S, D) tensors.
    # NOTE: the 1/sqrt(d_head) attention scale is pre-folded into wq/bq.
    q = jnp.dot(xc, wq_ref[...], preferred_element_type=jnp.float32) + bq_ref[...]
    k = jnp.dot(xc, wk_ref[...], preferred_element_type=jnp.float32) + bk_ref[...]
    v = jnp.dot(xc, wv_ref[...], preferred_element_type=jnp.float32) + bv_ref[...]

    # (S, D) -> (H, S, Dh): batched contraction over heads keeps the MXU fed.
    def heads(t):
        return t.reshape(S, H, Dh).transpose(1, 0, 2).astype(cdt)

    qh, kh, vh = heads(q), heads(k), heads(v)                 # (H, S, Dh)

    scores = jnp.einsum("hqd,hkd->hqk", qh, kh,
                        preferred_element_type=jnp.float32)   # (H, S, S) f32

    # Softmax over keys (f32; reciprocal-multiply, no divide).
    m = jnp.max(scores, axis=-1, keepdims=True)
    e = jnp.exp(scores - m)
    l = jnp.sum(e, axis=-1, keepdims=True)
    p = e * pl.reciprocal(l, approx=False)                    # (H, S, S)

    # Single lane-dense slab store of the attention weights.
    attn_ref[0] = p

    ctx = jnp.einsum("hqk,hkd->hqd", p.astype(cdt), vh,
                     preferred_element_type=jnp.float32)      # (H, S, Dh)
    ctx = ctx.transpose(1, 0, 2).reshape(S, D)                # (S, D)

    attn_out = jnp.dot(ctx.astype(cdt), wo_ref[...],
                       preferred_element_type=jnp.float32) + bo_ref[...]

    # Residual 1.
    x1 = x + attn_out

    # Feed-forward: Linear -> ReLU -> Linear (f32 activations).
    h1 = jnp.maximum(
        jnp.dot(x1.astype(cdt), w1_ref[...],
                preferred_element_type=jnp.float32) + b1_ref[...],
        0.0)
    ff = jnp.dot(h1.astype(cdt), w2_ref[...],
                 preferred_element_type=jnp.float32) + b2_ref[...]

    # Residual 2.
    out_ref[0] = x1 + ff


def transformer_encoder_layer(x, params, num_heads,
                              *, compute_dtype=jnp.bfloat16):
    """x: (B, S, D) float32. Returns (out (B,S,D), attn_weights (B,H,S,S))."""
    B, S, D = x.shape
    if D % num_heads != 0:
        raise ValueError(f"d_model={D} must be divisible by num_heads={num_heads}")
    d_ff = params["w1"].shape[1]
    H = num_heads
    Dh = D // H
    scale = 1.0 / math.sqrt(Dh)
    cdt = jnp.dtype(compute_dtype)

    # Fold the attention scale into the query projection (exactly equivalent
    # math: softmax((x Wq s + bq s)(xWk+bk)^T) == softmax(((xWq+bq)(xWk+bk)^T)s)).
    # Weights are shipped in the compute dtype (halves their VMEM footprint in
    # bf16 mode); biases stay f32 since they are added post-accumulation.
    wq = (params["wq"] * scale).astype(cdt)
    bq = params["bq"] * scale
    wk = params["wk"].astype(cdt)
    wv = params["wv"].astype(cdt)
    wo = params["wo"].astype(cdt)
    w1 = params["w1"].astype(cdt)
    w2 = params["w2"].astype(cdt)
    bk, bv, bo = params["bk"], params["bv"], params["bo"]
    b1, b2 = params["b1"], params["b2"]

    kernel = functools.partial(_encoder_kernel, num_heads)

    def full2d(shape):
        return pl.BlockSpec(shape, lambda b: (0, 0))

    in_specs = [
        pl.BlockSpec((1, S, D), lambda b: (b, 0, 0)),   # x
        full2d((D, D)), full2d((1, D)),                  # wq, bq
        full2d((D, D)), full2d((1, D)),                  # wk, bk
        full2d((D, D)), full2d((1, D)),                  # wv, bv
        full2d((D, D)), full2d((1, D)),                  # wo, bo
        full2d((D, d_ff)), full2d((1, d_ff)),            # w1, b1
        full2d((d_ff, D)), full2d((1, D)),               # w2, b2
    ]
    out_specs = [
        pl.BlockSpec((1, S, D), lambda b: (b, 0, 0)),
        pl.BlockSpec((1, H, S, S), lambda b: (b, 0, 0, 0)),
    ]
    out_shapes = [
        jax.ShapeDtypeStruct((B, S, D), jnp.float32),
        jax.ShapeDtypeStruct((B, H, S, S), jnp.float32),
    ]

    # Explicit VMEM budget from actual block sizes (inputs/outputs are
    # double-buffered by the pipeline; add intermediates + headroom).
    w_bytes = (4 * D * D + 2 * D * d_ff) * cdt.itemsize
    b_bytes = (5 * D + d_ff) * 4
    io_block_bytes = (2 * S * D + H * S * S) * 4
    interm_bytes = (6 * S * D + 3 * H * S * S + S * d_ff) * 4
    vmem_limit = 2 * (w_bytes + b_bytes + io_block_bytes) + interm_bytes + (4 << 20)
    # Clamp to [32 MiB, 64 MiB] so the request is valid on v7x (64 MiB VMEM/TC)
    # as well as v5e/v6e (128 MiB).
    vmem_limit = int(min(max(vmem_limit, 32 << 20), 64 << 20))

    # Advisory cost estimate for the surrounding XLA schedule.
    flops = 2 * B * (4 * S * D * D + 2 * S * S * D + 2 * S * D * d_ff)
    transcendentals = B * H * S * S                       # exp in softmax
    bytes_accessed = int(4 * (2 * B * S * D + B * H * S * S)
                         + B * (w_bytes + b_bytes))
    cost = pl.CostEstimate(flops=int(flops),
                           transcendentals=int(transcendentals),
                           bytes_accessed=bytes_accessed)

    return pl.pallas_call(
        kernel,
        out_shape=out_shapes,
        grid_spec=pltpu.PrefetchScalarGridSpec(
            num_scalar_prefetch=0,
            grid=(B,),
            in_specs=in_specs,
            out_specs=out_specs,
        ),
        compiler_params=pltpu.CompilerParams(
            dimension_semantics=("parallel",),
            vmem_limit_bytes=vmem_limit),
        cost_estimate=cost,
    )(x, wq, bq, wk, bk, wv, bv, wo, bo, w1, b1, w2, b2)


def reference_forward(x, params, num_heads):
    """Pure-JAX f32 reference matching the PyTorch module semantics."""
    B, S, D = x.shape
    d_head = D // num_heads
    q = x @ params["wq"] + params["bq"]
    k = x @ params["wk"] + params["bk"]
    v = x @ params["wv"] + params["bv"]

    def split(t):  # (B,S,D) -> (B,H,S,Dh)
        return t.reshape(B, S, num_heads, d_head).transpose(0, 2, 1, 3)

    qh, kh, vh = split(q), split(k), split(v)
    scores = jnp.einsum("bhqd,bhkd->bhqk", qh, kh) / math.sqrt(d_head)
    attn = jax.nn.softmax(scores, axis=-1)                       # (B,H,S,S)
    ctx = jnp.einsum("bhqk,bhkd->bhqd", attn, vh)
    ctx = ctx.transpose(0, 2, 1, 3).reshape(B, S, D)
    attn_out = ctx @ params["wo"] + params["bo"]
    x1 = x + attn_out
    h1 = jnp.maximum(x1 @ params["w1"] + params["b1"], 0.0)
    ff = h1 @ params["w2"] + params["b2"]
    return x1 + ff, attn


def init_params(key, d_model, d_ff):
    keys = jax.random.split(key, 12)
    s = 0.1
    return {
        "wq": s * jax.random.normal(keys[0], (d_model, d_model), jnp.float32),
        "bq": s * jax.random.normal(keys[1], (1, d_model), jnp.float32),
        "wk": s * jax.random.normal(keys[2], (d_model, d_model), jnp.float32),
        "bk": s * jax.random.normal(keys[3], (1, d_model), jnp.float32),
        "wv": s * jax.random.normal(keys[4], (d_model, d_model), jnp.float32),
        "bv": s * jax.random.normal(keys[5], (1, d_model), jnp.float32),
        "wo": s * jax.random.normal(keys[6], (d_model, d_model), jnp.float32),
        "bo": s * jax.random.normal(keys[7], (1, d_model), jnp.float32),
        "w1": s * jax.random.normal(keys[8], (d_model, d_ff), jnp.float32),
        "b1": s * jax.random.normal(keys[9], (1, d_ff), jnp.float32),
        "w2": s * jax.random.normal(keys[10], (d_ff, d_model), jnp.float32),
        "b2": s * jax.random.normal(keys[11], (1, d_model), jnp.float32),
    }


if __name__ == "__main__":
    B, S, d_model, num_heads, d_ff = 2, 8, 32, 4, 64

    key = jax.random.PRNGKey(0)
    kx, kp = jax.random.split(key)
    x = jax.random.normal(kx, (B, S, d_model), jnp.float32)
    params = init_params(kp, d_model, d_ff)

    ref_out, ref_attn = reference_forward(x, params, num_heads)

    # 1) f32 operands: tight agreement with the f32 reference.
    out, attn_w = transformer_encoder_layer(x, params, num_heads,
                                            compute_dtype=jnp.float32)
    out = jax.block_until_ready(out)
    attn_w = jax.block_until_ready(attn_w)
    np.testing.assert_allclose(np.asarray(out), np.asarray(ref_out),
                               rtol=1e-5, atol=1e-5)
    np.testing.assert_allclose(np.asarray(attn_w), np.asarray(ref_attn),
                               rtol=1e-5, atol=1e-5)

    # 2) bf16 matmul operands (the fast path on v6e/v7x), f32 accumulation.
    out_bf, attn_bf = transformer_encoder_layer(x, params, num_heads,
                                                compute_dtype=jnp.bfloat16)
    out_bf = jax.block_until_ready(out_bf)
    attn_bf = jax.block_until_ready(attn_bf)
    np.testing.assert_allclose(np.asarray(out_bf), np.asarray(ref_out),
                               rtol=5e-2, atol=5e-2)
    np.testing.assert_allclose(np.asarray(attn_bf), np.asarray(ref_attn),
                               rtol=5e-2, atol=5e-2)

    print("KERNEL_OK")
</pallas_src>

<mosaic_0001>
module attributes {stable_mosaic.version = 11 : i64} {
  func.func @_encoder_kernel(%arg0: i32, %arg1: memref<1x8x32xf32, #tpu.memory_space<vmem>>, %arg2: memref<32x32xf32, #tpu.memory_space<vmem>>, %arg3: memref<1x32xf32, #tpu.memory_space<vmem>>, %arg4: memref<32x32xf32, #tpu.memory_space<vmem>>, %arg5: memref<1x32xf32, #tpu.memory_space<vmem>>, %arg6: memref<32x32xf32, #tpu.memory_space<vmem>>, %arg7: memref<1x32xf32, #tpu.memory_space<vmem>>, %arg8: memref<32x32xf32, #tpu.memory_space<vmem>>, %arg9: memref<1x32xf32, #tpu.memory_space<vmem>>, %arg10: memref<32x64xf32, #tpu.memory_space<vmem>>, %arg11: memref<1x64xf32, #tpu.memory_space<vmem>>, %arg12: memref<64x32xf32, #tpu.memory_space<vmem>>, %arg13: memref<1x32xf32, #tpu.memory_space<vmem>>, %arg14: memref<1x8x32xf32, #tpu.memory_space<vmem>>, %arg15: memref<1x4x8x8xf32, #tpu.memory_space<vmem>>) attributes {dimension_semantics = [#tpu.dimension_semantics<parallel>], iteration_bounds = array<i64: 2>, scalar_prefetch = 0 : i64, scratch_operands = 0 : i64, tpu.core_type = #tpu.core_type<tc>, window_params = [{transform_indices = @transform_0, window_bounds = array<i64: 1, 8, 32>}, {pipeline_mode = #tpu.pipeline_mode<synchronous>, transform_indices = @transform_1, window_bounds = array<i64: 32, 32>}, {pipeline_mode = #tpu.pipeline_mode<synchronous>, transform_indices = @transform_2, window_bounds = array<i64: 1, 32>}, {pipeline_mode = #tpu.pipeline_mode<synchronous>, transform_indices = @transform_3, window_bounds = array<i64: 32, 32>}, {pipeline_mode = #tpu.pipeline_mode<synchronous>, transform_indices = @transform_4, window_bounds = array<i64: 1, 32>}, {pipeline_mode = #tpu.pipeline_mode<synchronous>, transform_indices = @transform_5, window_bounds = array<i64: 32, 32>}, {pipeline_mode = #tpu.pipeline_mode<synchronous>, transform_indices = @transform_6, window_bounds = array<i64: 1, 32>}, {pipeline_mode = #tpu.pipeline_mode<synchronous>, transform_indices = @transform_7, window_bounds = array<i64: 32, 32>}, {pipeline_mode = #tpu.pipeline_mode<synchronous>, transform_indices = @transform_8, window_bounds = array<i64: 1, 32>}, {pipeline_mode = #tpu.pipeline_mode<synchronous>, transform_indices = @transform_9, window_bounds = array<i64: 32, 64>}, {pipeline_mode = #tpu.pipeline_mode<synchronous>, transform_indices = @transform_10, window_bounds = array<i64: 1, 64>}, {pipeline_mode = #tpu.pipeline_mode<synchronous>, transform_indices = @transform_11, window_bounds = array<i64: 64, 32>}, {pipeline_mode = #tpu.pipeline_mode<synchronous>, transform_indices = @transform_12, window_bounds = array<i64: 1, 32>}, {transform_indices = @transform_13, window_bounds = array<i64: 1, 8, 32>}, {transform_indices = @transform_14, window_bounds = array<i64: 1, 4, 8, 8>}]} {
    %c0 = arith.constant 0 : index
    %c0_0 = arith.constant 0 : index
    %c0_1 = arith.constant 0 : index
    %0 = vector.load %arg1[%c0, %c0_0, %c0_1] : memref<1x8x32xf32, #tpu.memory_space<vmem>>, vector<1x8x32xf32>
    %1 = vector.shape_cast %0 : vector<1x8x32xf32> to vector<8x32xf32>
    %c0_2 = arith.constant 0 : index
    %c0_3 = arith.constant 0 : index
    %2 = vector.load %arg2[%c0_2, %c0_3] : memref<32x32xf32, #tpu.memory_space<vmem>>, vector<32x32xf32>
    %cst = arith.constant dense<0.000000e+00> : vector<8x32xf32>
    %3 = tpu.matmul %1, %2, %cst {dimension_numbers = #tpu.dot_dimension_numbers<[1], [0], [0], [1], [0, 0, 1, 1], [], []>} : vector<8x32xf32>, vector<32x32xf32>, vector<8x32xf32> -> vector<8x32xf32>
    %c0_4 = arith.constant 0 : index
    %c0_5 = arith.constant 0 : index
    %4 = vector.load %arg3[%c0_4, %c0_5] : memref<1x32xf32, #tpu.memory_space<vmem>>, vector<1x32xf32>
    %5 = vector.broadcast %4 : vector<1x32xf32> to vector<8x32xf32>
    %6 = arith.addf %3, %5 : vector<8x32xf32>
    %c0_6 = arith.constant 0 : index
    %c0_7 = arith.constant 0 : index
    %7 = vector.load %arg4[%c0_6, %c0_7] : memref<32x32xf32, #tpu.memory_space<vmem>>, vector<32x32xf32>
    %cst_8 = arith.constant dense<0.000000e+00> : vector<8x32xf32>
    %8 = tpu.matmul %1, %7, %cst_8 {dimension_numbers = #tpu.dot_dimension_numbers<[1], [0], [0], [1], [0, 0, 1, 1], [], []>} : vector<8x32xf32>, vector<32x32xf32>, vector<8x32xf32> -> vector<8x32xf32>
    %c0_9 = arith.constant 0 : index
    %c0_10 = arith.constant 0 : index
    %9 = vector.load %arg5[%c0_9, %c0_10] : memref<1x32xf32, #tpu.memory_space<vmem>>, vector<1x32xf32>
    %10 = vector.broadcast %9 : vector<1x32xf32> to vector<8x32xf32>
    %11 = arith.addf %8, %10 : vector<8x32xf32>
    %c0_11 = arith.constant 0 : index
    %c0_12 = arith.constant 0 : index
    %12 = vector.load %arg6[%c0_11, %c0_12] : memref<32x32xf32, #tpu.memory_space<vmem>>, vector<32x32xf32>
    %cst_13 = arith.constant dense<0.000000e+00> : vector<8x32xf32>
    %13 = tpu.matmul %1, %12, %cst_13 {dimension_numbers = #tpu.dot_dimension_numbers<[1], [0], [0], [1], [0, 0, 1, 1], [], []>} : vector<8x32xf32>, vector<32x32xf32>, vector<8x32xf32> -> vector<8x32xf32>
    %c0_14 = arith.constant 0 : index
    %c0_15 = arith.constant 0 : index
    %14 = vector.load %arg7[%c0_14, %c0_15] : memref<1x32xf32, #tpu.memory_space<vmem>>, vector<1x32xf32>
    %15 = vector.broadcast %14 : vector<1x32xf32> to vector<8x32xf32>
    %16 = arith.addf %13, %15 : vector<8x32xf32>
    %17 = vector.shape_cast %6 : vector<8x32xf32> to vector<8x4x8xf32>
    %18 = tpu.transpose %17, [1, 0, 2] : vector<8x4x8xf32> -> vector<4x8x8xf32>
    %19 = vector.shape_cast %11 : vector<8x32xf32> to vector<8x4x8xf32>
    %20 = tpu.transpose %19, [1, 0, 2] : vector<8x4x8xf32> -> vector<4x8x8xf32>
    %21 = vector.shape_cast %16 : vector<8x32xf32> to vector<8x4x8xf32>
    %22 = tpu.transpose %21, [1, 0, 2] : vector<8x4x8xf32> -> vector<4x8x8xf32>
    "tpu.trace_start"() <{level = 10 : i32, message = "hqd,hkd->hqk"}> : () -> ()
    %cst_16 = arith.constant dense<0.000000e+00> : vector<4x8x8xf32>
    %23 = tpu.matmul %18, %20, %cst_16 {dimension_numbers = #tpu.dot_dimension_numbers<[2], [2], [1], [1], [0, 0, 0, 1, 1, 1], [0], [0]>} : vector<4x8x8xf32>, vector<4x8x8xf32>, vector<4x8x8xf32> -> vector<4x8x8xf32>
    "tpu.trace_stop"() : () -> ()
    %cst_17 = arith.constant dense<0xFF800000> : vector<4x8xf32>
    %24 = vector.multi_reduction <maximumf>, %23, %cst_17 [2] : vector<4x8x8xf32> to vector<4x8xf32>
    %25 = vector.shape_cast %24 : vector<4x8xf32> to vector<4x8x1xf32>
    %26 = vector.broadcast %25 : vector<4x8x1xf32> to vector<4x8x8xf32>
    %27 = arith.subf %23, %26 : vector<4x8x8xf32>
    %28 = math.exp %27 : vector<4x8x8xf32>
    %cst_18 = arith.constant dense<0.000000e+00> : vector<4x8xf32>
    %29 = vector.multi_reduction <add>, %28, %cst_18 [2] : vector<4x8x8xf32> to vector<4x8xf32>
    %30 = vector.shape_cast %29 : vector<4x8xf32> to vector<4x8x1xf32>
    %31 = tpu.reciprocal %30 : vector<4x8x1xf32> -> vector<4x8x1xf32>
    %32 = vector.broadcast %31 : vector<4x8x1xf32> to vector<4x8x8xf32>
    %33 = arith.mulf %28, %32 : vector<4x8x8xf32>
    %c0_19 = arith.constant 0 : index
    %c0_20 = arith.constant 0 : index
    %c0_21 = arith.constant 0 : index
    %c0_22 = arith.constant 0 : index
    %34 = vector.load %arg15[%c0_19, %c0_20, %c0_21, %c0_22] : memref<1x4x8x8xf32, #tpu.memory_space<vmem>>, vector<1x4x8x8xf32>
    %35 = vector.shape_cast %34 : vector<1x4x8x8xf32> to vector<4x8x8xf32>
    %36 = vector.shape_cast %33 : vector<4x8x8xf32> to vector<1x4x8x8xf32>
    tpu.vector_store %arg15[%c0_19, %c0_20, %c0_21, %c0_22], %36 {strides = array<i32>} : memref<1x4x8x8xf32, #tpu.memory_space<vmem>>, vector<1x4x8x8xf32>,
    "tpu.trace_start"() <{level = 10 : i32, message = "hqk,hkd->hqd"}> : () -> ()
    %cst_23 = arith.constant dense<0.000000e+00> : vector<4x8x8xf32>
    %37 = tpu.matmul %33, %22, %cst_23 {dimension_numbers = #tpu.dot_dimension_numbers<[2], [1], [1], [2], [0, 0, 0, 1, 1, 2], [0], [0]>} : vector<4x8x8xf32>, vector<4x8x8xf32>, vector<4x8x8xf32> -> vector<4x8x8xf32>
    "tpu.trace_stop"() : () -> ()
    %38 = tpu.transpose %37, [1, 0, 2] : vector<4x8x8xf32> -> vector<8x4x8xf32>
    %39 = vector.shape_cast %38 : vector<8x4x8xf32> to vector<8x32xf32>
    %c0_24 = arith.constant 0 : index
    %c0_25 = arith.constant 0 : index
    %40 = vector.load %arg8[%c0_24, %c0_25] : memref<32x32xf32, #tpu.memory_space<vmem>>, vector<32x32xf32>
    %cst_26 = arith.constant dense<0.000000e+00> : vector<8x32xf32>
    %41 = tpu.matmul %39, %40, %cst_26 {dimension_numbers = #tpu.dot_dimension_numbers<[1], [0], [0], [1], [0, 0, 1, 1], [], []>} : vector<8x32xf32>, vector<32x32xf32>, vector<8x32xf32> -> vector<8x32xf32>
    %c0_27 = arith.constant 0 : index
    %c0_28 = arith.constant 0 : index
    %42 = vector.load %arg9[%c0_27, %c0_28] : memref<1x32xf32, #tpu.memory_space<vmem>>, vector<1x32xf32>
    %43 = vector.broadcast %42 : vector<1x32xf32> to vector<8x32xf32>
    %44 = arith.addf %41, %43 : vector<8x32xf32>
    %45 = arith.addf %1, %44 : vector<8x32xf32>
    %c0_29 = arith.constant 0 : index
    %c0_30 = arith.constant 0 : index
    %46 = vector.load %arg10[%c0_29, %c0_30] : memref<32x64xf32, #tpu.memory_space<vmem>>, vector<32x64xf32>
    %cst_31 = arith.constant dense<0.000000e+00> : vector<8x64xf32>
    %47 = tpu.matmul %45, %46, %cst_31 {dimension_numbers = #tpu.dot_dimension_numbers<[1], [0], [0], [1], [0, 0, 1, 1], [], []>} : vector<8x32xf32>, vector<32x64xf32>, vector<8x64xf32> -> vector<8x64xf32>
    %c0_32 = arith.constant 0 : index
    %c0_33 = arith.constant 0 : index
    %48 = vector.load %arg11[%c0_32, %c0_33] : memref<1x64xf32, #tpu.memory_space<vmem>>, vector<1x64xf32>
    %49 = vector.broadcast %48 : vector<1x64xf32> to vector<8x64xf32>
    %50 = arith.addf %47, %49 : vector<8x64xf32>
    %cst_34 = arith.constant 0.000000e+00 : f32
    %51 = vector.broadcast %cst_34 : f32 to vector<8x64xf32>
    %52 = arith.maximumf %50, %51 : vector<8x64xf32>
    %c0_35 = arith.constant 0 : index
    %c0_36 = arith.constant 0 : index
    %53 = vector.load %arg12[%c0_35, %c0_36] : memref<64x32xf32, #tpu.memory_space<vmem>>, vector<64x32xf32>
    %cst_37 = arith.constant dense<0.000000e+00> : vector<8x32xf32>
    %54 = tpu.matmul %52, %53, %cst_37 {dimension_numbers = #tpu.dot_dimension_numbers<[1], [0], [0], [1], [0, 0, 1, 1], [], []>} : vector<8x64xf32>, vector<64x32xf32>, vector<8x32xf32> -> vector<8x32xf32>
    %c0_38 = arith.constant 0 : index
    %c0_39 = arith.constant 0 : index
    %55 = vector.load %arg13[%c0_38, %c0_39] : memref<1x32xf32, #tpu.memory_space<vmem>>, vector<1x32xf32>
    %56 = vector.broadcast %55 : vector<1x32xf32> to vector<8x32xf32>
    %57 = arith.addf %54, %56 : vector<8x32xf32>
    %58 = arith.addf %45, %57 : vector<8x32xf32>
    %c0_40 = arith.constant 0 : index
    %c0_41 = arith.constant 0 : index
    %c0_42 = arith.constant 0 : index
    %59 = vector.load %arg14[%c0_40, %c0_41, %c0_42] : memref<1x8x32xf32, #tpu.memory_space<vmem>>, vector<1x8x32xf32>
    %60 = vector.shape_cast %59 : vector<1x8x32xf32> to vector<8x32xf32>
    %61 = vector.shape_cast %58 : vector<8x32xf32> to vector<1x8x32xf32>
    tpu.vector_store %arg14[%c0_40, %c0_41, %c0_42], %61 {strides = array<i32>} : memref<1x8x32xf32, #tpu.memory_space<vmem>>, vector<1x8x32xf32>,
    return
  }
  func.func @transform_0(%arg0: i32) -> (i32, i32, i32) {
    %c0_i32 = arith.constant 0 : i32
    %c0_i32_0 = arith.constant 0 : i32
    %c0_i32_1 = arith.constant 0 : i32
    return %arg0, %c0_i32, %c0_i32_0 : i32, i32, i32
  }
  func.func @transform_1(%arg0: i32) -> (i32, i32) {
    %c0_i32 = arith.constant 0 : i32
    %c0_i32_0 = arith.constant 0 : i32
    %c0_i32_1 = arith.constant 0 : i32
    return %c0_i32, %c0_i32_0 : i32, i32
  }
  func.func @transform_2(%arg0: i32) -> (i32, i32) {
    %c0_i32 = arith.constant 0 : i32
    %c0_i32_0 = arith.constant 0 : i32
    %c0_i32_1 = arith.constant 0 : i32
    return %c0_i32, %c0_i32_0 : i32, i32
  }
  func.func @transform_3(%arg0: i32) -> (i32, i32) {
    %c0_i32 = arith.constant 0 : i32
    %c0_i32_0 = arith.constant 0 : i32
    %c0_i32_1 = arith.constant 0 : i32
    return %c0_i32, %c0_i32_0 : i32, i32
  }
  func.func @transform_4(%arg0: i32) -> (i32, i32) {
    %c0_i32 = arith.constant 0 : i32
    %c0_i32_0 = arith.constant 0 : i32
    %c0_i32_1 = arith.constant 0 : i32
    return %c0_i32, %c0_i32_0 : i32, i32
  }
  func.func @transform_5(%arg0: i32) -> (i32, i32) {
    %c0_i32 = arith.constant 0 : i32
    %c0_i32_0 = arith.constant 0 : i32
    %c0_i32_1 = arith.constant 0 : i32
    return %c0_i32, %c0_i32_0 : i32, i32
  }
  func.func @transform_6(%arg0: i32) -> (i32, i32) {
    %c0_i32 = arith.constant 0 : i32
    %c0_i32_0 = arith.constant 0 : i32
    %c0_i32_1 = arith.constant 0 : i32
    return %c0_i32, %c0_i32_0 : i32, i32
  }
  func.func @transform_7(%arg0: i32) -> (i32, i32) {
    %c0_i32 = arith.constant 0 : i32
    %c0_i32_0 = arith.constant 0 : i32
    %c0_i32_1 = arith.constant 0 : i32
    return %c0_i32, %c0_i32_0 : i32, i32
  }
  func.func @transform_8(%arg0: i32) -> (i32, i32) {
    %c0_i32 = arith.constant 0 : i32
    %c0_i32_0 = arith.constant 0 : i32
    %c0_i32_1 = arith.constant 0 : i32
    return %c0_i32, %c0_i32_0 : i32, i32
  }
  func.func @transform_9(%arg0: i32) -> (i32, i32) {
    %c0_i32 = arith.constant 0 : i32
    %c0_i32_0 = arith.constant 0 : i32
    %c0_i32_1 = arith.constant 0 : i32
    return %c0_i32, %c0_i32_0 : i32, i32
  }
  func.func @transform_10(%arg0: i32) -> (i32, i32) {
    %c0_i32 = arith.constant 0 : i32
    %c0_i32_0 = arith.constant 0 : i32
    %c0_i32_1 = arith.constant 0 : i32
    return %c0_i32, %c0_i32_0 : i32, i32
  }
  func.func @transform_11(%arg0: i32) -> (i32, i32) {
    %c0_i32 = arith.constant 0 : i32
    %c0_i32_0 = arith.constant 0 : i32
    %c0_i32_1 = arith.constant 0 : i32
    return %c0_i32, %c0_i32_0 : i32, i32
  }
  func.func @transform_12(%arg0: i32) -> (i32, i32) {
    %c0_i32 = arith.constant 0 : i32
    %c0_i32_0 = arith.constant 0 : i32
    %c0_i32_1 = arith.constant 0 : i32
    return %c0_i32, %c0_i32_0 : i32, i32
  }
  func.func @transform_13(%arg0: i32) -> (i32, i32, i32) {
    %c0_i32 = arith.constant 0 : i32
    %c0_i32_0 = arith.constant 0 : i32
    %c0_i32_1 = arith.constant 0 : i32
    return %arg0, %c0_i32, %c0_i32_0 : i32, i32, i32
  }
  func.func @transform_14(%arg0: i32) -> (i32, i32, i32, i32) {
    %c0_i32 = arith.constant 0 : i32
    %c0_i32_0 = arith.constant 0 : i32
    %c0_i32_1 = arith.constant 0 : i32
    %c0_i32_2 = arith.constant 0 : i32
    return %arg0, %c0_i32, %c0_i32_0, %c0_i32_1 : i32, i32, i32, i32
  }
}

</mosaic_0001>

<bundles_post_ra>
// kernel: tpu_custom_call.1
= control target key start
LH: loop header
LB: loop body
LE: loop exit
PB: predicated region body
PF: predicated region fallthrough
CT: control target
= control target key end

     0   :  { %s3593_s0 = inlined_call_operand.hbm [shape: f32[2,8,32], index: 0, kind: input, shape index: {}]   ;;  %s3594_s1 = inlined_call_operand.vmem [shape: f32[32,32], index: 1, kind: input, shape index: {}]   ;;  %s3595_s2 = inlined_call_operand.vmem [shape: f32[1,32], index: 2, kind: input, shape index: {}]   ;;  %s3596_s3 = inlined_call_operand.vmem [shape: f32[32,32], index: 3, kind: input, shape index: {}]   ;;  %s3597_s4 = inlined_call_operand.vmem [shape: f32[1,32], index: 4, kind: input, shape index: {}]   ;;  %s3598_s5 = inlined_call_operand.vmem [shape: f32[32,32], index: 5, kind: input, shape index: {}]   ;;  %s3599_s6 = inlined_call_operand.vmem [shape: f32[1,32], index: 6, kind: input, shape index: {}]   ;;  %s3600_s7 = inlined_call_operand.hbm [shape: f32[32,32], index: 7, kind: input, shape index: {}]   ;;  %s3601_s8 = inlined_call_operand.vmem [shape: f32[1,32], index: 8, kind: input, shape index: {}]   ;;  %s3602_s9 = inlined_call_operand.hbm [shape: f32[32,64], index: 9, kind: input, shape index: {}]   ;;  %s3603_s10 = inlined_call_operand.vmem [shape: f32[1,64], index: 10, kind: input, shape index: {}]   ;;  %s3604_s11 = inlined_call_operand.vmem [shape: f32[64,32], index: 11, kind: input, shape index: {}]   ;;  %s3605_s12 = inlined_call_operand.vmem [shape: f32[1,32], index: 12, kind: input, shape index: {}]   ;;  %s3606_s13 = inlined_call_operand.hbm [shape: f32[2,8,32], index: 13, kind: output, shape index: {0}]   ;;  %s3607_s14 = inlined_call_operand.hbm [shape: f32[2,4,8,8], index: 14, kind: output, shape index: {1}]  }
   0x1   :  { %3616 = sst [smem:[#allocation17_spill]] %s3593_s0 }
   0x2   :  { %3617 = sst [smem:[#allocation18_spill]] %s3594_s1 }
   0x3   :  { %3618 = sst [smem:[#allocation19_spill]] %s3595_s2 }
   0x4   :  { %3619 = sst [smem:[#allocation20_spill]] %s3596_s3 }
   0x5   :  { %3620 = sst [smem:[#allocation21_spill]] %s3597_s4 }
   0x6   :  { %3621 = sst [smem:[#allocation22_spill]] %s3603_s10 }
   0x7   :  { %3622 = sst [smem:[#allocation23_spill]] %s3605_s12 }
   0x8   :  { %3623 = sst [smem:[#allocation24_spill]] %s3606_s13 }
   0x9   :  { %3624 = sst [smem:[#allocation25_spill]] %s3607_s14 }
   0xa   :  { %20 = vsyncpa [#allocation3], 0 }
   0xb   :  { %22 = vsyncpa [#allocation3 + $0x1], 0 }
   0xc   :  { %23 = vsyncpa [#allocation6], 0 }
   0xd   :  { %24 = vsyncpa [#allocation4], 0 }
   0xe   :  { %26 = vsyncpa [#allocation4 + $0x1], 0 }
   0xf   :  { %27 = vsyncpa [#allocation10], 0 }
  0x10   :  { %29 = vsyncpa [#allocation10 + $0x1], 0  ;;  %s3069_s29 = smov 0   ;;  %s3071_s30 = smov 0  }
  0x11   :  { %s3073_s15 = smov 0   ;;  %s3075_s16 = smov 0  }
  0x12 LB: > { %3625 = sst [smem:[#allocation15_spill]] %s2961_s29  ;;  %s3090_s17 = sadd.s32 4294967295, %s2973_s16   ;;  %s2973_s16 = sphi %s3075_s16, %s3656_s16   ;;  %s2969_s15 = sphi %s3073_s15, %s3655_s15   ;;  %s2965_s30 = sphi %s3071_s30, %s3654_s30   ;;  %s2961_s29 = sphi %s3069_s29, %s3653_s29  }
  0x13   : > { %s2424_s18 = sadd.s32 4294967294, %s2973_s16   ;;  %p55_p0 = scmp.ne.s32.totalorder %s2965_s30, %s2961_s29 }
  0x14   : > { %p3611_p1 = scmp.eq.s32.totalorder %s3090_s17, 0  ;;  %p337_p3 = scmp.eq.s32.totalorder %s2424_s18, 1 }
  0x15   : > { %p2425_p5 = scmp.ge.s32.totalorder %s2973_s16, 1  ;;  %p370_p7 = scmp.lt.s32.totalorder %s2973_s16, 3 }
  0x16   : > { %p3099_p4 = por %p3611_p1, %p55_p0  ;;  %p3104_p6 = por %p337_p3, %p55_p0 }
  0x17   : > { %p3109_p8 = pnand %p2425_p5, %p370_p7  ;;  %s2975_s22 = smov [#allocation5]  }
  0x18   : > { %s3626_s19 = scalar_select %p3099_p4, 1, 0 }
  0x19   : > { %s3627_s20 = scalar_select %p3104_p6, 1, 0 }
  0x1a   : > { %s400_s23 = sshll.u32 %s2975_s22, 4  ;;  %p2697_p9 = pneg %p3109_p8  ;;  %s3113_s23 = int_to_ptr.vmem [resolvable:$true] %s400_s23 }
  0x1b   : > { %3628 = sst [smem:[#allocation16_spill]] %s3627_s20  ;;  %s2976_s25 = smov [#allocation7]  }
  0x1c   : > { %p3120_p11 = pnand %p2697_p9, %p3611_p1  ;;  %s416_s26 = sshll.u32 %s2976_s25, 4  ;;  %s3124_s26 = int_to_ptr.vmem [resolvable:$true] %s416_s26 }
  0x1d   : > { %s2785_s18 = scalar_lea.hbm %s3600_s7, 512 }
  0x1e   : > { %p2786_p12 = scmp.ne.s32.totalorder %s3600_s7, %s2785_s18  ;;  %p2787_p13 = pneg %p3120_p11 }
  0x1f   : > { %p2792_p5 = scmp.lt.u32.totalorder %s2785_s18, %s3600_s7 }
  0x20   : > { %p2788_p0 = pnand %p2787_p13, %p2786_p12 }
  0x22   : > { %p2789_p3 = pneg %p2788_p0 }
  0x24   : > { %p2794_p7 = pnand %p2792_p5, %p2789_p3 }
  0x26   : > { %2797 = shalt.err (!%p2794_p7)
}
  0x27   : > { %s2798_s25 = scalar_lea.vmem %s3113_s23, 512  ;;  %p2806_p2 = scmp.lt.s32.totalorder %s3113_s23, %s3113_s23 }
  0x28   : > { %p2799_p9 = scmp.ne.s32.totalorder %s3113_s23, %s2798_s25  ;;  %p2807_p12 = scmp.lt.s32.totalorder %s2798_s25, %s2798_s25 }
  0x2a   : > { %p2801_p10 = pnand %p2799_p9, %p2787_p13  ;;  %p2808_p0 = por %p2807_p12, %p2806_p2 }
  0x2c   : > { %p2802_p1 = pneg %p2801_p10 }
  0x2e   : > { %p2809_p6 = pnand %p2808_p0, %p2802_p1 }
  0x30   : > { %2812 = shalt.err (!%p2809_p6)
}
  0x31   : > { %s2977_s13 = smov 128   ;;  %s2978_s29 = smov 8  }
  0x32   : > { %2700 = dma.hbm_to_vmem [thread:$0]  (!%p3120_p11), %s3600_s7, 512, %s3113_s23, [#allocation6], %s2977_s13, %s2977_s13, %s2978_s29  }
  0x33   : > { %s2813_s22 = scalar_lea.hbm %s3602_s9, 512 }
  0x34   : > { %p2814_p2 = scmp.ne.s32.totalorder %s3602_s9, %s2813_s22  ;;  %p2820_p10 = scmp.lt.u32.totalorder %s2813_s22, %s3602_s9 }
  0x36   : > { %p2816_p1 = pnand %p2814_p2, %p2787_p13 }
  0x38   : > { %p2817_p6 = pneg %p2816_p1 }
  0x3a   : > { %p2822_p3 = pnand %p2820_p10, %p2817_p6 }
  0x3c   : > { %2825 = shalt.err (!%p2822_p3)
}
  0x3d   : > { %s2826_s23 = scalar_lea.vmem %s3124_s26, 512  ;;  %p2834_p12 = scmp.lt.s32.totalorder %s3124_s26, %s3124_s26 }
  0x3e   : > { %p2827_p5 = scmp.ne.s32.totalorder %s3124_s26, %s2826_s23  ;;  %p2835_p0 = scmp.lt.s32.totalorder %s2826_s23, %s2826_s23 }
  0x40   : > { %p2829_p7 = pnand %p2827_p5, %p2787_p13  ;;  %p2836_p2 = por %p2835_p0, %p2834_p12 }
  0x42   : > { %p2830_p9 = pneg %p2829_p7 }
  0x44   : > { %p2837_p1 = pnand %p2836_p2, %p2830_p9 }
  0x46   : > { %2840 = shalt.err (!%p2837_p1)
}
  0x47   : > { %2703 = dma.hbm_to_vmem [thread:$0]  (!%p3120_p11), %s3602_s9, 512, %s3124_s26, [#allocation6], %s2977_s13, %s2977_s13, %s2978_s29  }
  0x48   : > { %s3179_s14 = sadd.s32 1, %s2973_s16   ;;  %s42_s24 = sadd.s32 1, %s2969_s15 }
  0x49   : > { %s39_s20 = ssub.s32 %s2973_s16, %s3179_s14  ;;  %p49_p13 = scmp.ne.s32.totalorder %s2969_s15, %s2965_s30 }
  0x4a   : > { %p40_p6 = scmp.eq.s32.totalorder %s39_s20, 0  ;;  %p50_p10 = scmp.eq.s32.totalorder %s2973_s16, 0 }
  0x4b   : > { %p3631_p3 = scmp.eq.s32.totalorder %s3090_s17, 1  ;;  %p2717_p7 = scmp.lt.s32.totalorder %s2973_s16, 2 }
  0x4c   : > { %s3195_s28 = scalar_select %p40_p6, %s2969_s15, %s42_s24  }
  0x4d   : > { %p3189_p5 = por %p3631_p3, %p49_p13  ;;  %p51_p9 = por %p50_p10, %p49_p13 }
  0x4e   : > { %s439_s18 = sand.u32 1, %s2969_s15   ;;  %s2430_s26 = sshll.u32 %s2973_s16, 7 }
  0x4f   : > { %s3632_s27 = scalar_select %p3189_p5, 1, 0 }
  0x50   : > { %s2429_s22 = sshll.u32 %s439_s18, 3  ;;  %s3633_s0 = sld [smem:[#allocation17_spill]] }
  0x51   : > { %s443_s23 = scalar_lea.vmem [#allocation2], %s2429_s22  ;;  %p3206_p11 = pnand %p2717_p7, %p51_p9 }
  0x52   : > { %s450_s10 = sshll.u32 %s443_s23, 4  ;;  %s440_s24 = scalar_lea.sflag [#allocation3], %s439_s18  ;;  %s3204_s10 = int_to_ptr.vmem [resolvable:$true] %s450_s10 }
  0x53   : > { %p2843_p0 = pneg %p3206_p11 }
  0x56   : > { %s3202_s25 = scalar_lea.hbm %s3633_s0, %s2430_s26  ;;  %s2846_s13 = scalar_lea.hbm %s3633_s0, 256 }
  0x57   : > { %s2841_s20 = scalar_lea.hbm %s3202_s25, 128  ;;  %p2847_p13 = scmp.lt.u32.totalorder %s3202_s25, %s3633_s0 }
  0x58   : > { %p2842_p12 = scmp.ne.s32.totalorder %s3202_s25, %s2841_s20  ;;  %p2848_p6 = scmp.lt.u32.totalorder %s2846_s13, %s2841_s20 }
  0x59   : > { %p2850_p3 = scmp.lt.u32.totalorder %s2841_s20, %s3202_s25 }
  0x5a   : > { %p2844_p2 = pnand %p2843_p0, %p2842_p12  ;;  %p2849_p10 = por %p2848_p6, %p2847_p13 }
  0x5c   : > { %p2845_p1 = pneg %p2844_p2  ;;  %p2851_p7 = por %p2850_p3, %p2849_p10 }
  0x5e   : > { %p2852_p9 = pnand %p2851_p7, %p2845_p1 }
  0x60   : > { %2855 = shalt.err (!%p2852_p9)
}
  0x61   : > { %s2856_s18 = scalar_lea.vmem %s3204_s10, 128  ;;  %s2979_s26 = smov [#allocation2]  }
  0x62   : > { %p2857_p12 = scmp.ne.s32.totalorder %s3204_s10, %s2856_s18  ;;  %s2861_s22 = sshll.u32 %s2979_s26, 4  ;;  %s2862_s22 = int_to_ptr.vmem [resolvable:$false] %s2861_s22 }
  0x63   : > { %s2863_s29 = scalar_lea.vmem %s2862_s22, 256  ;;  %p2864_p4 = scmp.lt.s32.totalorder %s3204_s10, %s2862_s22 }
  0x64   : > { %p2859_p2 = pnand %p2857_p12, %p2843_p0  ;;  %p2865_p13 = scmp.lt.s32.totalorder %s2863_s29, %s2856_s18 }
  0x66   : > { %p2860_p5 = pneg %p2859_p2  ;;  %p2866_p6 = por %p2865_p13, %p2864_p4 }
  0x68   : > { %p2867_p10 = pnand %p2866_p6, %p2860_p5 }
  0x6a   : > { %2870 = shalt.err (!%p2867_p10)
}
  0x6b   : > { %2707 = dma.hbm_to_vmem [thread:$0]  (!%p3206_p11), %s3202_s25, 128, %s3204_s10, %s440_s24  }
  0x6c   : > { %459 = sbr.rel (%p3109_p8) target bundleno = 2060 (0x80c), region = 72  ;;  %s3238_s20 = sand.u32 (!%p3109_p8), 1, %s2965_s30  }
  0x6d   : > { %s3615_s13 = sshll.u32 (!%p3109_p8), %s3238_s20, 3  ;;  %s462_s23 = scalar_lea.sflag (!%p3109_p8), [#allocation3], %s3238_s20 }
  0x6e   : > { %s465_s18 = scalar_lea.vmem (!%p3109_p8), [#allocation2], %s3615_s13  ;;  %p3635_p4 = scmp.ne.s32.totalorder (!%p3109_p8), %s3626_s19, 0 }
  0x73   : > { %2944 = dma.done.wait (%p3635_p4), %s462_s23, 128  }
  0x74   : > { %2946 = vsyncadd (%p3635_p4), %s462_s23, 4294967168  ;;  %p3636_p5 = scmp.eq.s32.totalorder %s3090_s17, 0 }
  0x76   : > { %2948 = dma.done.wait (%p3636_p5), [#allocation6], 1024   ;;  %p3637_p8 = pmov %p3636_p5 }
  0x77   : > { %v2980_v0 = vmov 0.0|0.0   ;;  %vm2981_vm0 = vmmov 0   ;;  %v2982_v1 = vmov 0.0   ;;  %s3638_s1 = sld [smem:[#allocation18_spill]]  ;;  %s3639_s3 = sld [smem:[#allocation20_spill]]  ;;  %v3277_v10 = vld [vmem:[%s465_s18] sm:$0xff]  ;;  %v786_v31 = vlaneseq }
  0x78   : > { %2950 = vsyncadd (%p3637_p8), [#allocation6], 4294966272  ;;  %2641 = vmatprep.subr.bf16.mxu1 %v2980_v0  ;;  %2535 = vmatprep.mubr.msk.f32.mxu1 %vm2981_vm0, %v2982_v1  ;;  %vm535_vm1 = vcmask 261120   ;;  %s3640_s2 = sld [smem:[#allocation19_spill]]  ;;  %s2983_s22 = smov 120   ;;  %v690_v19 = vld [vmem:[%s3598_s5] sm:$0xff] }
  0x79   : > { %2653 = vmatprep.subr.bf16.mxu0 %v2980_v0  ;;  %2557 = vmatprep.mubr.msk.f32.mxu0 %vm2981_vm0, %v2982_v1  ;;  %v691_v20 = vld [vmem:[%s3598_s5 + $0x8] sm:$0xff]  ;;  %s3641_s4 = sld [smem:[#allocation21_spill]]  ;;  %v692_v26 = vld [vmem:[%s3598_s5 + $0x10] sm:$0xff]  ;;  %v693_v27 = vld [vmem:[%s3598_s5 + $0x18] sm:$0xff]  ;;  %s2984_s29 = smov 104   ;;  %v787_v36 = vshrl.u32 %v786_v31, 7 }
  0x7a   : > { %v2654_v22 = vpack.c.bf16 %v691_v20, %v690_v19  ;;  %v2657_v28 = vpack.c.bf16 %v693_v27, %v692_v26  ;;  %s2985_s23 = smov 112   ;;  %v2986_v29 = vmov 1983009808   ;;  %v2987_v33 = vmov 1934713408   ;;  %s2988_s10 = smov 16  }
  0x7b   : > { %v784_v30 = vunpack.c.l.s4 %v2986_v29  ;;  %v816_v34 = vunpack.c.l.s4 %v2987_v33  ;;  %vm1209_vm2 = vcmask 64512   ;;  %s2989_s12 = smov 8   ;;  %s2990_s24 = smov 24   ;;  %vm2003_vm3 = vcmask 130048  }
  0x7c   : > { %2655 = vmatpush3.bf16.msra.mxu0 %v2654_v22  ;;  %vm2005_vm4 = vcmask 195584   ;;  %vm2192_vm5 = vcmask 523264   ;;  %s3643_s13 = sld [smem:[#allocation25_spill]]  ;;  %p3644_p0 = scmp.ne.s32.totalorder %s3632_s27, 0 }
  0x7d   : > { %v524_v2 = vld [vmem:[%s3638_s1] sm:$0xff]  ;;  %v525_v3 = vld [vmem:[%s3638_s1 + $0x8] sm:$0xff]  ;;  %v526_v4 = vld [vmem:[%s3638_s1 + $0x10] sm:$0xff]  ;;  %2656 = vmatprep.subr.bf16.mxu0 %v2980_v0  ;;  %v785_v35 = vunpack.c.0.s8 %v784_v30  ;;  %v817_v39 = vunpack.c.0.s8 %v816_v34  ;;  %s2991_s26 = smov [#allocation9]  }
  0x7e   : > { %v2642_v5 = vpack.c.bf16 %v525_v3, %v524_v2  ;;  %v527_v6 = vld [vmem:[%s3638_s1 + $0x18] sm:$0xff]  ;;  %v609_v8 = vld [vmem:[%s3639_s3] sm:$0xff]  ;;  %v610_v9 = vld [vmem:[%s3639_s3 + $0x8] sm:$0xff] }
  0x7f   : > { %v2645_v7 = vpack.c.bf16 %v527_v6, %v526_v4  ;;  %v2648_v11 = vpack.c.bf16 %v610_v9, %v609_v8  ;;  %v611_v12 = vld [vmem:[%s3639_s3 + $0x10] sm:$0xff]  ;;  %v612_v13 = vld [vmem:[%s3639_s3 + $0x18] sm:$0xff]  ;;  %v2437_v15 = vld [vmem:[%s3640_s2] ss:$0 sm:$0xff]  ;;  %v3331_v40 = vsub.s32 %v785_v35, %v787_v36  ;;  %v3333_v47 = vsub.s32 %v817_v39, %v787_v36 }
  0x80   : > { %2643 = vmatpush3.bf16.msra.mxu1 %v2642_v5  ;;  %v2651_v14 = vpack.c.bf16 %v612_v13, %v611_v12  ;;  %v2439_v21 = vld [vmem:[%s3641_s4] ss:$0 sm:$0xff]  ;;  %2658 = vmatpush3.bf16.msra.mxu0 %v2657_v28 }
  0x81   : > { %2644 = vmatprep.subr.bf16.mxu1 %v2980_v0  ;;  %2570 = vmatprep.subr.mxu0 %v2982_v1 }
  0x83   : > { %2558 = vmatmul.mubr.msk.f32.vlgmr.msra.gmra.mrb[0].mxu0 %vm535_vm1, %v3277_v10 }
  0x84   : > { %2646 = vmatpush3.bf16.msra.mxu1 %v2645_v7  ;;  %2572 = vmatprep.mubr.msk.f32.mxu0 %vm2981_vm0, %v2982_v1 }
  0x85   : > { %2647 = vmatprep.subr.bf16.mxu1 %v2980_v0 }
  0x87   : > { %2536 = vmatmul.mubr.msk.f32.vlgmr.msra.gmra.mrb[0].mxu1 %vm535_vm1, %v3277_v10 }
  0x88   : > { %2649 = vmatpush3.bf16.msra.mxu1 %v2648_v11  ;;  %2546 = vmatprep.mubr.msk.f32.mxu1 %vm2981_vm0, %v2982_v1 }
  0x89   : > { %2650 = vmatprep.subr.bf16.mxu1 %v2980_v0 }
  0x8c   : > { %2652 = vmatpush3.bf16.msra.mxu1 %v2651_v14 }
  0x8d   : > { %2560 = vmatprep.subr.mxu1 %v2982_v1 }
  0x8f   : > { %2547 = vmatmul.mubr.msk.f32.vlgmr.msra.gmra.mrb[2].mxu1 %vm535_vm1, %v3277_v10 }
  0x90   : > { %2562 = vmatprep.mubr.msk.f32.mxu1 %vm2981_vm0, %v2982_v1 }
 0x15a   : > { %v605_v16 = vpop.f32.mrb[0].mxu1 }
 0x15b   : > { %v3299_v17 = vadd.f32 %v2437_v15, %v605_v16  ;;  %v2537_v18 = vpop.f32.mrb[1].mxu1 }
 0x15d   : > { %772 = vrot.lane.b32.xlu1 %v3299_v17, %s2983_s22 }
 0x162   : > { %v686_v23 = vpop.f32.mrb[2].mxu1 }
 0x163   : > { %v687_v24 = vadd.f32 %v2439_v21, %v686_v23  ;;  %v2548_v25 = vpop.f32.mrb[3].mxu1 }
 0x165   : > { %924 = vrot.lane.b32.xlu1 %v687_v24, %s2984_s29  ;;  %918 = vrot.lane.b32.xlu0 %v687_v24, %s2983_s22 }
 0x169   : > { %778 = vrot.lane.b32.xlu1 %v3299_v17, %s2984_s29  ;;  %921 = vrot.lane.b32.xlu0 %v687_v24, %s2985_s23 }
 0x16d   : > { %775 = vrot.lane.b32.xlu0 %v3299_v17, %s2985_s23 }
 0x1cf   : > { %v773_v32 = vpop.permute.xlu1 %772 }
 0x1d7   : > { %v925_v37 = vpop.permute.xlu1 %924  ;;  %v919_v38 = vpop.permute.xlu0 %918 }
 0x1d8   : > { %v943_v41 = vcombine.low %v919_v38, %v925_v37  ;;  %v944_v42 = vcombine.high %v919_v38, %v925_v37 }
 0x1da   : > { %v951_v48 = vrot.slane %v943_v41, %v3331_v40  ;;  %v958_v49 = vrot.slane %v944_v42, %v3331_v40 }
 0x1db   : > { %v922_v43 = vpop.permute.xlu0 %921  ;;  %v779_v44 = vpop.permute.xlu1 %778 }
 0x1dc   : > { %v927_v45 = vcombine.low %v687_v24, %v922_v43  ;;  %v928_v46 = vcombine.high %v687_v24, %v922_v43  ;;  %v797_v52 = vcombine.low %v773_v32, %v779_v44  ;;  %v798_v53 = vcombine.high %v773_v32, %v779_v44 }
 0x1de   : > { %v935_v50 = vrot.slane %v927_v45, %v3331_v40  ;;  %v942_v51 = vrot.slane %v928_v46, %v3331_v40  ;;  %v805_v3 = vrot.slane %v797_v52, %v3331_v40  ;;  %v812_v4 = vrot.slane %v798_v53, %v3331_v40 }
 0x1df   : > { %v776_v54 = vpop.permute.xlu0 %775 }
 0x1e0   : > { %v959_v55 = vcombine.low %v935_v50, %v951_v48  ;;  %v960_v56 = vcombine.high %v935_v50, %v951_v48  ;;  %v975_v57 = vcombine.low %v942_v51, %v958_v49  ;;  %v976_v58 = vcombine.high %v942_v51, %v958_v49 }
 0x1e1   : > { %v781_v59 = vcombine.low %v3299_v17, %v776_v54  ;;  %v782_v60 = vcombine.high %v3299_v17, %v776_v54 }
 0x1e2   : > { %v967_v61 = vrot.slane %v959_v55, %v3333_v47  ;;  %v974_v62 = vrot.slane %v960_v56, %v3333_v47  ;;  %v983_v63 = vrot.slane %v975_v57, %v3333_v47  ;;  %v990_v2 = vrot.slane %v976_v58, %v3333_v47  ;;  %v767_v58 = vpop.f32.mrb[0].mxu0 }
 0x1e3   : > { %v789_v5 = vrot.slane %v781_v59, %v3331_v40  ;;  %v796_v6 = vrot.slane %v782_v60, %v3331_v40  ;;  %v2559_v59 = vpop.f32.mrb[1].mxu0 }
 0x1e4   : > { %v995_v7 = vcombine.low %v967_v61, %v974_v62  ;;  %v2445_v8 = vcombine.high %v967_v61, %v974_v62  ;;  %v1011_v9 = vcombine.low %v983_v63, %v990_v2  ;;  %v2446_v11 = vcombine.high %v983_v63, %v990_v2 }
 0x1e5   : > { %v813_v12 = vcombine.low %v789_v5, %v805_v3  ;;  %v814_v13 = vcombine.high %v789_v5, %v805_v3  ;;  %v829_v14 = vcombine.low %v796_v6, %v812_v4  ;;  %v830_v15 = vcombine.high %v796_v6, %v812_v4 }
 0x1e6   : > { %v1002_v16 = vrot.slane %v995_v7, %v3331_v40  ;;  %v1010_v17 = vrot.slane %v2445_v8, %v3331_v40  ;;  %v1018_v18 = vrot.slane %v1011_v9, %v3331_v40  ;;  %v1026_v19 = vrot.slane %v2446_v11, %v3331_v40  ;;  %v2441_v11 = vld [vmem:[%s3599_s6] ss:$0 sm:$0xff] }
 0x1e7   : > { %v821_v20 = vrot.slane %v813_v12, %v3333_v47  ;;  %v828_v21 = vrot.slane %v814_v13, %v3333_v47  ;;  %v837_v22 = vrot.slane %v829_v14, %v3333_v47  ;;  %v844_v23 = vrot.slane %v830_v15, %v3333_v47 }
 0x1e8   : > { %v1027_v24 = vcombine.low %v1002_v16, %v1010_v17  ;;  %v1028_v25 = vcombine.high %v1002_v16, %v1010_v17  ;;  %v1043_v26 = vcombine.low %v1018_v18, %v1026_v19  ;;  %v1044_v27 = vcombine.high %v1018_v18, %v1026_v19 }
 0x1e9   : > { %v849_v28 = vcombine.low %v821_v20, %v828_v21  ;;  %v2443_v29 = vcombine.high %v821_v20, %v828_v21  ;;  %v865_v30 = vcombine.low %v837_v22, %v844_v23  ;;  %v2444_v31 = vcombine.high %v837_v22, %v844_v23 }
 0x1ea   : > { %v1035_v32 = vrot.slane %v1027_v24, %v3333_v47  ;;  %v1051_v33 = vrot.slane %v1043_v26, %v3333_v47  ;;  %v1042_v34 = vrot.slane %v1028_v25, %v3333_v47  ;;  %v1058_v35 = vrot.slane %v1044_v27, %v3333_v47 }
 0x1eb   : > { %v856_v36 = vrot.slane %v849_v28, %v3331_v40  ;;  %v864_v37 = vrot.slane %v2443_v29, %v3331_v40  ;;  %v872_v38 = vrot.slane %v865_v30, %v3331_v40  ;;  %v880_v39 = vrot.slane %v2444_v31, %v3331_v40 }
 0x1ec   : > { %v1059_v41 = vcombine.low %v1035_v32, %v1051_v33  ;;  %v1061_v42 = vcombine.low %v1042_v34, %v1058_v35  ;;  %v1060_v54 = vcombine.high %v1035_v32, %v1051_v33  ;;  %v1062_v56 = vcombine.high %v1042_v34, %v1058_v35 }
 0x1ed   : > { %v881_v43 = vcombine.low %v856_v36, %v864_v37  ;;  %v882_v44 = vcombine.high %v856_v36, %v864_v37  ;;  %v897_v45 = vcombine.low %v872_v38, %v880_v39  ;;  %v898_v46 = vcombine.high %v872_v38, %v880_v39 }
 0x1ee   : > { %2561 = vmatpush3.xpose.msk.msra.mxu1 %vm1209_vm2, %v1059_v41  ;;  %2571 = vmatpush3.xpose.msk.msra.mxu0 %vm1209_vm2, %v1061_v42  ;;  %v768_v12 = vadd.f32 %v2441_v11, %v767_v58 }
 0x1ef   : > { %2565 = vmatprep.subr.mxu1 %v2982_v1  ;;  %v889_v48 = vrot.slane %v881_v43, %v3333_v47  ;;  %v905_v49 = vrot.slane %v897_v45, %v3333_v47  ;;  %v896_v50 = vrot.slane %v882_v44, %v3333_v47  ;;  %v912_v51 = vrot.slane %v898_v46, %v3333_v47 }
 0x1f0   : > { %2580 = vmatprep.subr.mxu0 %v2982_v1 }
 0x1f1   : > { %v913_v52 = vcombine.low %v889_v48, %v905_v49  ;;  %v915_v53 = vcombine.low %v896_v50, %v912_v51  ;;  %v914_v55 = vcombine.high %v889_v48, %v905_v49  ;;  %v916_v57 = vcombine.high %v896_v50, %v912_v51 }
 0x1f3   : > { %2563 = vmatmul.mubr.msk.f32.vlgmr.msra.gmra.mrb[4].mxu1 %vm1209_vm2, %v913_v52  ;;  %2573 = vmatmul.mubr.msk.f32.vlgmr.msra.gmra.mrb[2].mxu0 %vm1209_vm2, %v915_v53 }
 0x1f4   : > { %2566 = vmatpush3.xpose.msk.msra.mxu1 %vm1209_vm2, %v1060_v54  ;;  %2567 = vmatprep.mubr.msk.f32.mxu1 %vm2981_vm0, %v2982_v1 }
 0x1f5   : > { %2575 = vmatprep.subr.mxu1 %v2982_v1  ;;  %2582 = vmatprep.mubr.msk.f32.mxu0 %vm2981_vm0, %v2982_v1 }
 0x1f7   : > { %2568 = vmatmul.mubr.msk.f32.vlgmr.msra.gmra.mrb[6].mxu1 %vm1209_vm2, %v914_v55 }
 0x1f8   : > { %2576 = vmatpush3.xpose.msk.msra.mxu1 %vm1209_vm2, %v1062_v56  ;;  %2577 = vmatprep.mubr.msk.f32.mxu1 %vm2981_vm0, %v2982_v1 }
 0x1f9   : > { %2585 = vmatprep.subr.mxu1 %v2982_v1 }
 0x1fb   : > { %2578 = vmatmul.mubr.msk.f32.vlgmr.msra.gmra.mrb[8].mxu1 %vm1209_vm2, %v916_v57 }
 0x1fc   : > { %2587 = vmatprep.mubr.msk.f32.mxu1 %vm2981_vm0, %v2982_v1 }
 0x2c6   : > { %v1282_v60 = vpop.f32.mrb[4].mxu1  ;;  %v1434_v61 = vpop.f32.mrb[2].mxu0 }
 0x2c7   : > { %v2564_v62 = vpop.f32.mrb[5].mxu1  ;;  %v2574_v63 = vpop.f32.mrb[3].mxu0  ;;  %v1514_v2 = vsel %vm1209_vm2, %v1282_v60, -inf  ;;  %v1520_v5 = vsel %vm1209_vm2, %v1434_v61, -inf }
 0x2c8   : > { %1515 = vmax.xlane.f32.xlu0 %v1514_v2 }
 0x2ca   : > { %v1358_v3 = vpop.f32.mrb[6].mxu1 }
 0x2cb   : > { %v2569_v4 = vpop.f32.mrb[7].mxu1  ;;  %v1517_v6 = vsel %vm1209_vm2, %v1358_v3, -inf }
 0x2cc   : > { %1521 = vmax.xlane.f32.xlu0 %v1520_v5  ;;  %1518 = vmax.xlane.f32.xlu1 %v1517_v6 }
 0x2ce   : > { %v1510_v7 = vpop.f32.mrb[8].mxu1 }
 0x2cf   : > { %v2579_v8 = vpop.f32.mrb[9].mxu1  ;;  %v1523_v9 = vsel %vm1209_vm2, %v1510_v7, -inf }
 0x2d0   : > { %1524 = vmax.xlane.f32.xlu0 %v1523_v9 }
 0x2dd   : > { %1064 = vrot.lane.b32.xlu1 %v768_v12, %s2983_s22  ;;  %s2436_s22 = sshll.u32 %s3238_s20, 5 }
 0x2de   : > { %s3404_s25 = scalar_lea.vmem [#allocation9], %s2436_s22 }
 0x2df   : > { %s2300_s19 = sshll.u32 %s3404_s25, 4  ;;  %s3512_s19 = int_to_ptr.vmem [resolvable:$true] %s2300_s19 }
 0x2e0   : > { %s2871_s18 = scalar_lea.vmem %s3512_s19, 512 }
 0x2e1   : > { %p2872_p11 = scmp.ne.s32.totalorder %s3512_s19, %s2871_s18 }
 0x2e3   : > { %p2873_p1 = pnand %p2872_p11, %p3644_p0 }
 0x2e5   : > { %p2874_p3 = pneg %p2873_p1 }
 0x355   : > { %v1516_v13 = vpop.xlane.xlu0 %1515 }
 0x356   : > { %v1526_v14 = vsub.f32 %v1282_v60, %v1516_v13 }
 0x358   : > { %v1530_v15 = vmul.f32 1.442695, %v1526_v14 }
 0x359   : > { %v1522_v16 = vpop.xlane.xlu0 %1521  ;;  %v1519_v17 = vpop.xlane.xlu1 %1518 }
 0x35a   : > { %2769 = vpow2.f32 %v1530_v15  ;;  %v1528_v18 = vsub.f32 %v1434_v61, %v1522_v16  ;;  %v1527_v19 = vsub.f32 %v1358_v3, %v1519_v17 }
 0x35c   : > { %v1534_v20 = vmul.f32 1.442695, %v1528_v18  ;;  %v1532_v21 = vmul.f32 1.442695, %v1527_v19 }
 0x35d   : > { %v1525_v22 = vpop.xlane.xlu0 %1524  ;;  %v1065_v33 = vpop.permute.xlu1 %1064 }
 0x35e   : > { %2771 = vpow2.f32 %v1534_v20  ;;  %v1529_v23 = vsub.f32 %v1510_v7, %v1525_v22 }
 0x35f   : > { %2773 = vpow2.f32 %v1532_v21 }
 0x360   : > { %v1536_v24 = vmul.f32 1.442695, %v1529_v23 }
 0x362   : > { %2775 = vpow2.f32 %v1536_v24 }
 0x364   : > { %v2770_v25 = vpop.eup %2769 }
 0x365   : > { %v1538_v26 = vsel %vm1209_vm2, %v2770_v25, 0.0 }
 0x366   : > { %1539 = vadd.xlane.f32.xlu1 %v1538_v26  ;;  %v2008_v26 = vld [vmem:[#allocation5 + $0x8] sm:$0xff] }
 0x368   : > { %v2772_v27 = vpop.eup %2771 }
 0x369   : > { %v2774_v28 = vpop.eup %2773  ;;  %v1544_v29 = vsel %vm1209_vm2, %v2772_v27, 0.0 }
 0x36a   : > { %1545 = vadd.xlane.f32.xlu1 %v1544_v29  ;;  %v1541_v30 = vsel %vm1209_vm2, %v2774_v28, 0.0 }
 0x36b   : > { %1542 = vadd.xlane.f32.xlu0 %v1541_v30 }
 0x36c   : > { %v2776_v31 = vpop.eup %2775 }
 0x36d   : > { %v1547_v32 = vsel %vm1209_vm2, %v2776_v31, 0.0 }
 0x36f   : > { %1548 = vadd.xlane.f32.xlu0 %v1547_v32 }
 0x37b   : > { %1070 = vrot.lane.b32.xlu1 %v768_v12, %s2984_s29  ;;  %s3642_s29 = sld [smem:[#allocation22_spill]] }
 0x385   : > { %1067 = vrot.lane.b32.xlu0 %v768_v12, %s2985_s23  ;;  %s2476_s23 = sshll.u32 %s3090_s17, 9 }
 0x3f3   : > { %v1540_v34 = vpop.xlane.xlu1 %1539 }
 0x3f4   : > { %2777 = vrcp.f32 %v1540_v34 }
 0x3f7   : > { %v1546_v35 = vpop.xlane.xlu1 %1545 }
 0x3f8   : > { %2779 = vrcp.f32 %v1546_v35  ;;  %v1543_v36 = vpop.xlane.xlu0 %1542 }
 0x3f9   : > { %2781 = vrcp.f32 %v1543_v36 }
 0x3fb   : > { %v1071_v37 = vpop.permute.xlu1 %1070 }
 0x3fc   : > { %v1549_v38 = vpop.xlane.xlu0 %1548  ;;  %v1089_v41 = vcombine.low %v1065_v33, %v1071_v37  ;;  %v1090_v43 = vcombine.high %v1065_v33, %v1071_v37 }
 0x3fd   : > { %2783 = vrcp.f32 %v1549_v38 }
 0x3fe   : > { %v2778_v39 = vpop.eup %2777  ;;  %v1097_v49 = vrot.slane %v1089_v41, %v3331_v40  ;;  %v1104_v52 = vrot.slane %v1090_v43, %v3331_v40 }
 0x3ff   : > { %v1554_v42 = vmul.f32 %v2778_v39, %v2770_v25  ;;  %v2007_v25 = vld [vmem:[#allocation5] sm:$0xff] }
 0x400   : > { %v1068_v44 = vpop.permute.xlu0 %1067 }
 0x401   : > { %1558 = vst.msk [vmem:[%s3404_s25] sm:$0xff] %vm1209_vm2, %v1554_v42  ;;  %v1073_v45 = vcombine.low %v768_v12, %v1068_v44  ;;  %v1074_v46 = vcombine.high %v768_v12, %v1068_v44 }
 0x402   : > { %v2780_v48 = vpop.eup %2779 }
 0x403   : > { %v2782_v50 = vpop.eup %2781  ;;  %v1556_v51 = vmul.f32 %v2780_v48, %v2772_v27  ;;  %v1081_v53 = vrot.slane %v1073_v45, %v3331_v40  ;;  %v1088_v54 = vrot.slane %v1074_v46, %v3331_v40  ;;  %v2660_v27 = vpack.c.bf16 %v2008_v26, %v2007_v25  ;;  %v2177_v26 = vld [vmem:[%s3604_s11] sm:$0xff] }
 0x404   : > { %v1555_v55 = vmul.f32 %v2782_v50, %v2774_v28  ;;  %v2009_v50 = vld [vmem:[#allocation5 + $0x10] sm:$0xff] }
 0x405   : > { %1560 = vst.msk [vmem:[%s3404_s25 + $0x10] sm:$0xff] %vm1209_vm2, %v1556_v51  ;;  %v1105_v56 = vcombine.low %v1081_v53, %v1097_v49  ;;  %v1106_v57 = vcombine.high %v1081_v53, %v1097_v49  ;;  %v1121_v58 = vcombine.low %v1088_v54, %v1104_v52  ;;  %v1122_v59 = vcombine.high %v1088_v54, %v1104_v52 }
 0x406   : > { %1559 = vst.msk [vmem:[%s3404_s25 + $0x8] sm:$0xff] %vm1209_vm2, %v1555_v55 }
 0x407   : > { %v2784_v60 = vpop.eup %2783  ;;  %v1113_v61 = vrot.slane %v1105_v56, %v3333_v47  ;;  %v1120_v62 = vrot.slane %v1106_v57, %v3333_v47  ;;  %v1129_v63 = vrot.slane %v1121_v58, %v3333_v47  ;;  %v1136_v2 = vrot.slane %v1122_v59, %v3333_v47 }
 0x408   : > { %v1557_v3 = vmul.f32 %v2784_v60, %v2776_v31 }
 0x409   : > { %v1141_v4 = vcombine.low %v1113_v61, %v1120_v62  ;;  %v2447_v5 = vcombine.high %v1113_v61, %v1120_v62  ;;  %v1157_v6 = vcombine.low %v1129_v63, %v1136_v2  ;;  %v2448_v7 = vcombine.high %v1129_v63, %v1136_v2 }
 0x40a   : > { %1561 = vst.msk [vmem:[%s3404_s25 + $0x18] sm:$0xff] %vm1209_vm2, %v1557_v3 }
 0x40b   : > { %v1148_v8 = vrot.slane %v1141_v4, %v3331_v40  ;;  %v1156_v9 = vrot.slane %v2447_v5, %v3331_v40  ;;  %v1164_v11 = vrot.slane %v1157_v6, %v3331_v40  ;;  %v1172_v12 = vrot.slane %v2448_v7, %v3331_v40  ;;  %v2093_v4 = vld [vmem:[#allocation7 + $0x8] sm:$0xff] }
 0x40d   : > { %v1173_v13 = vcombine.low %v1148_v8, %v1156_v9  ;;  %v1189_v14 = vcombine.low %v1164_v11, %v1172_v12  ;;  %v1174_v15 = vcombine.high %v1148_v8, %v1156_v9  ;;  %v1190_v16 = vcombine.high %v1164_v11, %v1172_v12 }
 0x40f   : > { %v1181_v17 = vrot.slane %v1173_v13, %v3333_v47  ;;  %v1197_v18 = vrot.slane %v1189_v14, %v3333_v47  ;;  %v1188_v19 = vrot.slane %v1174_v15, %v3333_v47  ;;  %v1204_v20 = vrot.slane %v1190_v16, %v3333_v47 }
 0x411   : > { %v1205_v21 = vcombine.low %v1181_v17, %v1197_v18  ;;  %v1206_v22 = vcombine.high %v1181_v17, %v1197_v18  ;;  %v1207_v23 = vcombine.low %v1188_v19, %v1204_v20  ;;  %v1208_v24 = vcombine.high %v1188_v19, %v1204_v20 }
 0x413   : > { %2581 = vmatpush3.msra.mxu0 %v1205_v21  ;;  %2586 = vmatpush3.msra.mxu1 %v1206_v22 }
 0x414   : > { %2583 = vmatmul.mubr.msk.f32.vlgmr.msra.gmra.mrb[4].mxu0 %vm1209_vm2, %v1554_v42  ;;  %2588 = vmatmul.mubr.msk.f32.vlgmr.msra.gmra.mrb[10].mxu1 %vm1209_vm2, %v1555_v55 }
 0x415   : > { %2590 = vmatprep.subr.mxu0 %v2982_v1  ;;  %2595 = vmatprep.subr.mxu1 %v2982_v1 }
 0x416   : > { %2591 = vmatpush3.msra.mxu0 %v1207_v23  ;;  %2596 = vmatpush3.msra.mxu1 %v1208_v24  ;;  %v2094_v23 = vld [vmem:[#allocation7 + $0x10] sm:$0xff]  ;;  %v2095_v24 = vld [vmem:[#allocation7 + $0x18] sm:$0xff] }
 0x417   : > { %2592 = vmatprep.mubr.msk.f32.mxu0 %vm2981_vm0, %v2982_v1  ;;  %2597 = vmatprep.mubr.msk.f32.mxu1 %vm2981_vm0, %v2982_v1  ;;  %v2669_v25 = vpack.c.bf16 %v2095_v24, %v2094_v23 }
 0x418   : > { %2593 = vmatmul.mubr.msk.f32.vlgmr.msra.gmra.mrb[6].mxu0 %vm1209_vm2, %v1556_v51  ;;  %2598 = vmatmul.mubr.msk.f32.vlgmr.msra.gmra.mrb[12].mxu1 %vm1209_vm2, %v1557_v3  ;;  %v2010_v51 = vld [vmem:[#allocation5 + $0x18] sm:$0xff]  ;;  %v2092_v3 = vld [vmem:[#allocation7] sm:$0xff] }
 0x419   : > { %2659 = vmatprep.subr.bf16.mxu0 %v2980_v0  ;;  %2608 = vmatprep.mubr.msk.f32.mxu0 %vm2981_vm0, %v2982_v1  ;;  %v2663_v56 = vpack.c.bf16 %v2010_v51, %v2009_v50  ;;  %v2666_v5 = vpack.c.bf16 %v2093_v4, %v2092_v3 }
 0x41a   : > { %2665 = vmatprep.subr.bf16.mxu1 %v2980_v0  ;;  %2619 = vmatprep.mubr.msk.f32.mxu1 %vm2981_vm0, %v2982_v1 }
 0x41b   : > { %2661 = vmatpush3.bf16.msra.mxu0 %v2660_v27  ;;  %2667 = vmatpush3.bf16.msra.mxu1 %v2666_v5  ;;  %v2178_v27 = vld [vmem:[%s3604_s11 + $0x8] sm:$0xff] }
 0x41c   : > { %2662 = vmatprep.subr.bf16.mxu0 %v2980_v0  ;;  %2668 = vmatprep.subr.bf16.mxu1 %v2980_v0 }
 0x41f   : > { %2664 = vmatpush3.bf16.msra.mxu0 %v2663_v56  ;;  %2670 = vmatpush3.bf16.msra.mxu1 %v2669_v25 }
 0x420   : > { %2671 = vmatprep.subr.bf16.mxu0 %v2980_v0 }
 0x4e7   : > { %v1631_v28 = vpop.f32.mrb[4].mxu0  ;;  %v1704_v29 = vpop.f32.mrb[10].mxu1 }
 0x4e8   : > { %v2584_v30 = vpop.f32.mrb[5].mxu0  ;;  %v2589_v31 = vpop.f32.mrb[11].mxu1 }
 0x4e9   : > { %v2181_v31 = vld [vmem:[%s3604_s11 + $0x20] sm:$0xff] }
 0x4eb   : > { %v1777_v32 = vpop.f32.mrb[6].mxu0  ;;  %v1850_v33 = vpop.f32.mrb[12].mxu1 }
 0x4ec   : > { %v1854_v34 = vcombine.low %v1631_v28, %v1777_v32  ;;  %v1855_v35 = vcombine.high %v1631_v28, %v1777_v32  ;;  %v1870_v36 = vcombine.low %v1704_v29, %v1850_v33  ;;  %v1871_v37 = vcombine.high %v1704_v29, %v1850_v33  ;;  %v2594_v38 = vpop.f32.mrb[7].mxu0  ;;  %v2599_v39 = vpop.f32.mrb[13].mxu1  ;;  %v2179_v28 = vld [vmem:[%s3604_s11 + $0x10] sm:$0xff]  ;;  %v2182_v32 = vld [vmem:[%s3604_s11 + $0x28] sm:$0xff] }
 0x4ed   : > { %v2672_v29 = vpack.c.bf16 %v2178_v27, %v2177_v26  ;;  %v2678_v33 = vpack.c.bf16 %v2182_v32, %v2181_v31  ;;  %v2183_v39 = vld [vmem:[%s3604_s11 + $0x30] sm:$0xff] }
 0x4ee   : > { %v1862_v41 = vrot.slane %v1854_v34, %v3331_v40  ;;  %v1869_v42 = vrot.slane %v1855_v35, %v3331_v40  ;;  %v1878_v43 = vrot.slane %v1870_v36, %v3331_v40  ;;  %v1885_v44 = vrot.slane %v1871_v37, %v3331_v40  ;;  %v2463_v34 = vld [vmem:[%s3601_s8] ss:$0 sm:$0xff] }
 0x4f0   : > { %v1886_v45 = vcombine.low %v1862_v41, %v1878_v43  ;;  %v1887_v46 = vcombine.high %v1862_v41, %v1878_v43  ;;  %v1902_v48 = vcombine.low %v1869_v42, %v1885_v44  ;;  %v1903_v49 = vcombine.high %v1869_v42, %v1885_v44  ;;  %v2465_v42 = vld [vmem:[%s3642_s29] ss:$0 sm:$0xff]  ;;  %s2875_s29 = sshll.u32 %s2991_s26, 4  ;;  %s2876_s29 = int_to_ptr.vmem [resolvable:$false] %s2875_s29 }
 0x4f1   : > { %s2877_s25 = scalar_lea.vmem %s2876_s29, 1024  ;;  %p2878_p7 = scmp.lt.s32.totalorder %s3512_s19, %s2876_s29 }
 0x4f2   : > { %v1894_v52 = vrot.slane %v1886_v45, %v3333_v47  ;;  %v1901_v53 = vrot.slane %v1887_v46, %v3333_v47  ;;  %v1910_v54 = vrot.slane %v1902_v48, %v3333_v47  ;;  %v1917_v55 = vrot.slane %v1903_v49, %v3333_v47  ;;  %p2879_p9 = scmp.lt.s32.totalorder %s2877_s25, %s2871_s18 }
 0x4f4   : > { %v1922_v57 = vcombine.low %v1894_v52, %v1901_v53  ;;  %v2461_v58 = vcombine.high %v1894_v52, %v1901_v53  ;;  %v1938_v59 = vcombine.low %v1910_v54, %v1917_v55  ;;  %v2462_v60 = vcombine.high %v1910_v54, %v1917_v55  ;;  %p2880_p12 = por %p2879_p9, %p2878_p7 }
 0x4f6   : > { %v1929_v61 = vrot.slane %v1922_v57, %v3331_v40  ;;  %v1937_v62 = vrot.slane %v2461_v58, %v3331_v40  ;;  %v1945_v63 = vrot.slane %v1938_v59, %v3331_v40  ;;  %v1953_v2 = vrot.slane %v2462_v60, %v3331_v40  ;;  %p2881_p2 = pnand %p2880_p12, %p2874_p3 }
 0x4f8   : > { %v1955_v6 = vcombine.high %v1929_v61, %v1937_v62  ;;  %v1971_v7 = vcombine.high %v1945_v63, %v1953_v2  ;;  %v1954_v8 = vcombine.low %v1929_v61, %v1937_v62  ;;  %v1970_v9 = vcombine.low %v1945_v63, %v1953_v2 }
 0x4fa   : > { %v1969_v11 = vrot.slane %v1955_v6, %v3333_v47  ;;  %v1985_v12 = vrot.slane %v1971_v7, %v3333_v47  ;;  %v1962_v13 = vrot.slane %v1954_v8, %v3333_v47  ;;  %v1978_v14 = vrot.slane %v1970_v9, %v3333_v47 }
 0x4fc   : > { %v1988_v40 = vcombine.low %v1969_v11, %v1985_v12  ;;  %v1987_v15 = vcombine.high %v1962_v13, %v1978_v14  ;;  %v1989_v16 = vcombine.high %v1969_v11, %v1985_v12  ;;  %v1986_v17 = vcombine.low %v1962_v13, %v1978_v14 }
 0x4fe   : > { %1995 = vrot.lane.b32.xlu0 %v1988_v40, %s2988_s10  ;;  %1991 = vrot.lane.b32.xlu1 %v1987_v15, %s2989_s12  ;;  %s3510_s10 = scalar_lea.hbm %s3643_s13, %s2476_s23 }
 0x502   : > { %1999 = vrot.lane.b32.xlu1 %v1989_v16, %s2990_s24 }
 0x570   : > { %v1992_v18 = vpop.permute.xlu1 %1991  ;;  %v1996_v19 = vpop.permute.xlu0 %1995 }
 0x571   : > { %v2002_v20 = vsel %vm1209_vm2, %v1986_v17, %v1992_v18 }
 0x572   : > { %v2004_v21 = vsel %vm2003_vm3, %v2002_v20, %v1996_v19 }
 0x574   : > { %v2000_v47 = vpop.permute.xlu1 %1999 }
 0x575   : > { %v2006_v22 = vsel %vm2005_vm4, %v2004_v21, %v2000_v47 }
 0x576   : > { %2609 = vmatmul.mubr.msk.f32.vlgmr.msra.gmra.mrb[8].mxu0 %vm535_vm1, %v2006_v22 }
 0x577   : > { %2638 = vmatprep.mubr.msk.f32.mxu0 %vm2981_vm0, %v2982_v1  ;;  %v2180_v1 = vld [vmem:[%s3604_s11 + $0x18] sm:$0xff]  ;;  %2673 = vmatpush3.bf16.msra.mxu0 %v2672_v29 }
 0x578   : > { %v2675_v30 = vpack.c.bf16 %v2180_v1, %v2179_v28  ;;  %2674 = vmatprep.subr.bf16.mxu0 %v2980_v0 }
 0x57b   : > { %2676 = vmatpush3.bf16.msra.mxu0 %v2675_v30 }
 0x57c   : > { %2677 = vmatprep.subr.bf16.mxu0 %v2980_v0 }
 0x57f   : > { %2679 = vmatpush3.bf16.msra.mxu0 %v2678_v33 }
 0x580   : > { %2680 = vmatprep.subr.bf16.mxu0 %v2980_v0  ;;  %v2184_v0 = vld [vmem:[%s3604_s11 + $0x38] sm:$0xff] }
 0x581   : > { %v2681_v41 = vpack.c.bf16 %v2184_v0, %v2183_v39 }
 0x583   : > { %2682 = vmatpush3.bf16.msra.mxu0 %v2681_v41 }
 0x649   : > { %v2087_v35 = vpop.f32.mrb[8].mxu0 }
 0x64a   : > { %v2088_v36 = vadd.f32 %v2463_v34, %v2087_v35  ;;  %v2610_v37 = vpop.f32.mrb[9].mxu0 }
 0x64c   : > { %v2091_v38 = vadd.f32 %v2088_v36, %v3277_v10 }
 0x64e   : > { %2620 = vmatmul.mubr.msk.f32.vlgmr.msra.gmra.mrb[14].mxu1 %vm535_vm1, %v2091_v38 }
 0x721   : > { %v2172_v43 = vpop.f32.mrb[14].mxu1 }
 0x722   : > { %v2173_v10 = vadd.f32 %v2465_v42, %v2172_v43  ;;  %v2621_v44 = vpop.f32.mrb[15].mxu1 }
 0x724   : > { %v2176_v45 = vmax.f32 %v2173_v10, 0.0 }
 0x726   : > { %2639 = vmatmul.mubr.msk.f32.vlgmr.msra.gmra.mrb[10].mxu0 %vm2192_vm5, %v2176_v45 }
 0x727   : > { %2884 = shalt.err (!%p2881_p2)
}
 0x728   : > { %s2885_s23 = scalar_lea.hbm %s3510_s10, 512  ;;  %s2889_s26 = scalar_lea.hbm %s3643_s13, 1024 }
 0x729   : > { %p2886_p13 = scmp.ne.s32.totalorder %s3510_s10, %s2885_s23  ;;  %p2890_p4 = scmp.lt.u32.totalorder %s3510_s10, %s3643_s13 }
 0x72a   : > { %p2891_p5 = scmp.lt.u32.totalorder %s2889_s26, %s2885_s23  ;;  %p2893_p11 = scmp.lt.u32.totalorder %s2885_s23, %s3510_s10 }
 0x72b   : > { %p2887_p6 = pnand %p2886_p13, %p3644_p0 }
 0x72c   : > { %p2892_p8 = por %p2891_p5, %p2890_p4 }
 0x72d   : > { %p2888_p10 = pneg %p2887_p6 }
 0x72e   : > { %p2894_p1 = por %p2893_p11, %p2892_p8 }
 0x730   : > { %p2895_p3 = pnand %p2894_p1, %p2888_p10 }
 0x732   : > { %2898 = shalt.err (!%p2895_p3)
}
 0x733   : > { %s2992_s18 = smov 128   ;;  %s3645_s25 = scalar_lea.sflag [#allocation10], %s3238_s20 }
 0x734   : > { %2694 = dma.vmem_to_hbm [thread:$0]  (%p3644_p0), %s3512_s19, 512, %s3510_s10, %s3645_s25, %s2992_s18, %s2992_s18, %s2989_s12  }
 0x735   : > { %s3646_s22 = sld [smem:[#allocation23_spill]]  ;;  %s2471_s23 = sshll.u32 %s3090_s17, 7 }
 0x736   : > { %s3647_s26 = sshll.u32 %s3238_s20, 3  ;;  %s3648_s3 = sld [smem:[#allocation24_spill]] }
 0x737   : > { %s515_s29 = scalar_lea.vmem [#allocation8], %s3647_s26  ;;  %s2269_s12 = scalar_lea.sflag [#allocation4], %s3238_s20 }
 0x738   : > { %s2287_s0 = sshll.u32 %s515_s29, 4  ;;  %s2993_s19 = smov [#allocation8]   ;;  %s3550_s0 = int_to_ptr.vmem [resolvable:$true] %s2287_s0 }
 0x739   : > { %s2899_s17 = scalar_lea.vmem %s3550_s0, 128  ;;  %s2903_s10 = sshll.u32 %s2993_s19, 4  ;;  %s2904_s10 = int_to_ptr.vmem [resolvable:$false] %s2903_s10 }
 0x73a   : > { %p2900_p7 = scmp.ne.s32.totalorder %s3550_s0, %s2899_s17  ;;  %s2905_s18 = scalar_lea.vmem %s2904_s10, 256 }
 0x73b   : > { %v2467_v46 = vld [vmem:[%s3646_s22] ss:$0 sm:$0xff]  ;;  %p2906_p2 = scmp.lt.s32.totalorder %s3550_s0, %s2904_s10  ;;  %p2907_p13 = scmp.lt.s32.totalorder %s2905_s18, %s2899_s17 }
 0x73c   : > { %s3548_s4 = scalar_lea.hbm %s3648_s3, %s2471_s23  ;;  %p2901_p9 = pnand %p2900_p7, %p3644_p0 }
 0x73d   : > { %p2908_p6 = por %p2907_p13, %p2906_p2 }
 0x73e   : > { %p2902_p12 = pneg %p2901_p9 }
 0x740   : > { %p2909_p10 = pnand %p2908_p6, %p2902_p12 }
 0x7f9   : > { %v2262_v48 = vpop.f32.mrb[10].mxu0 }
 0x7fa   : > { %v2263_v49 = vadd.f32 %v2467_v46, %v2262_v48  ;;  %v2640_v50 = vpop.f32.mrb[11].mxu0 }
 0x7fc   : > { %v2266_v51 = vadd.f32 %v2263_v49, %v2091_v38 }
 0x7fe   : > { %2267 = vst.msk [vmem:[%s515_s29] sm:$0xff] %vm535_vm1, %v2266_v51 }
 0x7ff   : > { %2912 = shalt.err (!%p2909_p10)
}
 0x800   : > { %s2913_s1 = scalar_lea.hbm %s3548_s4, 128  ;;  %s2917_s25 = scalar_lea.hbm %s3648_s3, 256 }
 0x801   : > { %p2914_p4 = scmp.ne.s32.totalorder %s3548_s4, %s2913_s1  ;;  %p2918_p11 = scmp.lt.u32.totalorder %s3548_s4, %s3648_s3 }
 0x802   : > { %p2919_p1 = scmp.lt.u32.totalorder %s2917_s25, %s2913_s1  ;;  %p2921_p7 = scmp.lt.u32.totalorder %s2913_s1, %s3548_s4 }
 0x803   : > { %p2915_p5 = pnand %p2914_p4, %p3644_p0 }
 0x804   : > { %p2920_p3 = por %p2919_p1, %p2918_p11 }
 0x805   : > { %p2916_p8 = pneg %p2915_p5 }
 0x806   : > { %p2922_p9 = por %p2921_p7, %p2920_p3 }
 0x808   : > { %p2923_p12 = pnand %p2922_p9, %p2916_p8 }
 0x80a   : > { %2926 = shalt.err (!%p2923_p12)
}
 0x80b   : > { %2693 = dma.vmem_to_hbm [thread:$0]  (%p3644_p0), %s3550_s0, 128, %s3548_s4, %s2269_s12  }
 0x80c PF: > { %s3649_s22 = sld [smem:[#allocation15_spill]]  ;;  %s3650_s23 = sld [smem:[#allocation16_spill]] }
 0x80d   : > { %p3652_p13 = scmp.ge.s32.totalorder %s2973_s16, 2 }
 0x812   : > { %s2315_s26 = sand.u32 1, %s3649_s22   ;;  %p3651_p2 = scmp.ne.s32.totalorder %s3650_s23, 0 }
 0x813   : > { %s2316_s29 = scalar_lea.sflag [#allocation4], %s2315_s26 }
 0x814   : > { %p2709_p6 = pnand %p3652_p13, %p3651_p2 }
 0x816   : > { %2952 = dma.done.wait (!%p2709_p6), %s2316_s29, 128  }
 0x817   : > { %2954 = vsyncadd (!%p2709_p6), %s2316_s29, 4294967168  ;;  %s2325_s17 = scalar_lea.sflag [#allocation10], %s2315_s26 }
 0x818   : > { %2956 = dma.done.wait (!%p2709_p6), %s2325_s17, 512  }
 0x819   : > { %2958 = vsyncadd (!%p2709_p6), %s2325_s17, 4294966784  ;;  %p32_p0 = scmp.ge.s32.totalorder %s3179_s14, 4   ;;  %s3653_s29 = smov %s2965_s30 }
 0x81a   : > { %s3654_s30 = smov %s2969_s15  ;;  %s3655_s15 = smov %s3195_s28 }
 0x81b   : > { %s3656_s16 = smov %s3179_s14  ;;  %34 = sbr.rel (!%p32_p0) target bundleno = 18 (0x12), region = 142 }
 0x822   :  { %2330 = vsyncpa [#allocation3], 1 }
 0x823   :  { %2332 = vsyncpa [#allocation3 + $0x1], 1 }
 0x824   :  { %2333 = vsyncpa [#allocation6], 1 }
 0x825   :  { %2334 = vsyncpa [#allocation4], 1 }
 0x826   :  { %2336 = vsyncpa [#allocation4 + $0x1], 1 }
 0x827   :  { %2337 = vsyncpa [#allocation10], 1 }
 0x828   :  { %2339 = vsyncpa [#allocation10 + $0x1], 1 }

</bundles_post_ra>
